<compile_context>
chip_gen: v6e
topology: v6e:2x2x1
jax: 0.10.0
libtpu: 0.0.40
codegen_flags: <defaults>
</compile_context>

<pallas_src>
import math

import jax
import jax.numpy as jnp
from jax.experimental import pallas as pl
from jax.experimental.pallas import tpu as pltpu

# ---------------- config (small, consistent with the module) ----------------
BATCH = 2
SEQ = 8
HIDDEN = 32              # config.HIDDEN_SIZE
INTERMEDIATE = 64        # config.INTERMEDIATE_SIZE
NUM_HEADS = 4            # config.NUM_ATTENTION_HEADS (MQA: many Q heads, 1 KV head)
HEAD_DIM = HIDDEN // NUM_HEADS
LN_EPS = 1e-5            # config.LAYER_NORM_EPS
# config.HIDDEN_DROPOUT_PROB: dropout is identity at inference -> no-op here.


def _layer_norm(h, gamma, beta):
    mu = jnp.mean(h, axis=-1, keepdims=True)
    var = jnp.mean((h - mu) ** 2, axis=-1, keepdims=True)
    return (h - mu) * jax.lax.rsqrt(var + LN_EPS) * gamma + beta


def _gelu_exact(x):
    # PyTorch nn.GELU() default = exact erf formulation (kept for module
    # semantics; the tanh approximation would move this onto the EUP).
    return 0.5 * x * (1.0 + jax.lax.erf(x * (1.0 / math.sqrt(2.0))))


def zephyra_layer_kernel(
    x_ref, mask_ref,
    ln1_g_ref, ln1_b_ref,
    wqkv_ref, bqkv_ref, wo_ref, bo_ref,
    ln2_g_ref, ln2_b_ref,
    w1_ref, b1_ref, w2_ref, b2_ref,
    y_ref, kv_ref,
):
    f32 = jnp.float32
    bf16 = jnp.bfloat16
    NHD = NUM_HEADS * HEAD_DIM

    x = x_ref[...]                       # (B*S, H) f32
    mask = mask_ref[...]                 # (B, S)  f32 additive key mask

    # ---- attention branch (pre-norm) ----
    xn = _layer_norm(x, ln1_g_ref[...], ln1_b_ref[...])

    # fused Q|K|V projection: one MXU matmul, bf16 operands, f32 accumulation
    qkv = jnp.dot(xn.astype(bf16), wqkv_ref[...],
                  preferred_element_type=f32) + bqkv_ref[...]      # (B*S, NHD+2*HD)
    q = qkv[:, :NHD]                     # (B*S, NH*HD)
    kv = qkv[:, NHD:]                    # (B*S, 2*HD)  lane-packed present (k|v)
    k = kv[:, :HEAD_DIM]
    v = kv[:, HEAD_DIM:]

    scale = 1.0 / math.sqrt(HEAD_DIM)
    ctx_rows = []
    for b in range(BATCH):               # static, tiny; heads are batched below
        q_b = q[b * SEQ:(b + 1) * SEQ, :]                          # (S, NH*HD)
        k_b = k[b * SEQ:(b + 1) * SEQ, :].astype(bf16)             # (S, HD)
        v_b = v[b * SEQ:(b + 1) * SEQ, :].astype(bf16)             # (S, HD)
        # stack heads along the sublane axis -> one score matmul + one softmax
        q_heads = jnp.concatenate(
            [q_b[:, h * HEAD_DIM:(h + 1) * HEAD_DIM] for h in range(NUM_HEADS)],
            axis=0).astype(bf16)                                   # (NH*S, HD)
        s = jax.lax.dot_general(                                   # q @ k^T (no explicit transpose)
            q_heads, k_b, (((1,), (1,)), ((), ())),
            preferred_element_type=f32) * scale                    # (NH*S, S)
        s = s + mask[b:b + 1, :]                                   # key mask, bcast over rows
        s = s - jnp.max(s, axis=-1, keepdims=True)                 # one batched reduction
        p = jnp.exp(s)
        p = p * pl.reciprocal(jnp.sum(p, axis=-1, keepdims=True), approx=True)
        ctx_h = jnp.dot(p.astype(bf16), v_b,
                        preferred_element_type=f32)                # (NH*S, HD)
        # un-stack heads back onto lanes: (S, NH*HD)
        ctx_rows.append(jnp.concatenate(
            [ctx_h[h * SEQ:(h + 1) * SEQ, :] for h in range(NUM_HEADS)], axis=1))
    ctx = jnp.concatenate(ctx_rows, axis=0)                        # (B*S, NH*HD)

    attn = jnp.dot(ctx.astype(bf16), wo_ref[...],
                   preferred_element_type=f32) + bo_ref[...]       # (B*S, H)

    h1 = x + attn                        # residual (dropout = identity in eval)

    # ---- feed-forward branch (pre-norm) ----
    hn = _layer_norm(h1, ln2_g_ref[...], ln2_b_ref[...])
    f = jnp.dot(hn.astype(bf16), w1_ref[...],
                preferred_element_type=f32) + b1_ref[...]
    f = _gelu_exact(f)
    f = jnp.dot(f.astype(bf16), w2_ref[...],
                preferred_element_type=f32) + b2_ref[...]

    y_ref[...] = (h1 + f).astype(y_ref.dtype)    # residual (dropout = identity)
    kv_ref[...] = kv.astype(kv_ref.dtype)        # lane-packed present (k|v)


def zephyra_layer(x, params, attention_mask=None):
    """x: (B, S, H) float32.  attention_mask: optional (B, S) additive key mask."""
    B, S, H = x.shape
    if attention_mask is None:
        mask = jnp.zeros((B, S), jnp.float32)
    else:
        mask = attention_mask.astype(jnp.float32).reshape(B, S)

    (ln1g, ln1b, wq, bq, wk, bk, wv, bv, wo, bo,
     ln2g, ln2b, w1, b1, w2, b2) = params

    # Fuse Q|K|V into a single weight/bias; store matmul weights as bf16
    # (accumulation inside the kernel is f32).
    wqkv = jnp.concatenate([wq, wk, wv], axis=1).astype(jnp.bfloat16)   # (H, NHD+2*HD)
    bqkv = jnp.concatenate([bq, bk, bv], axis=1)                        # (1, NHD+2*HD) f32

    x2 = x.reshape(B * S, H)     # fold batch: single invocation, M = B*S rows

    vmem = pl.BlockSpec(memory_space=pltpu.MemorySpace.VMEM)
    inputs = (x2, mask, ln1g, ln1b, wqkv, bqkv,
              wo.astype(jnp.bfloat16), bo, ln2g, ln2b,
              w1.astype(jnp.bfloat16), b1, w2.astype(jnp.bfloat16), b2)

    y2, kv2 = pl.pallas_call(
        zephyra_layer_kernel,
        out_shape=[jax.ShapeDtypeStruct((B * S, H), jnp.float32),
                   jax.ShapeDtypeStruct((B * S, 2 * HEAD_DIM), jnp.float32)],
        in_specs=[vmem] * len(inputs),
        out_specs=[vmem, vmem],
    )(*inputs)

    y = y2.reshape(B, S, H)
    kv = kv2.reshape(B, S, 2 * HEAD_DIM)
    return y, (kv[..., :HEAD_DIM], kv[..., HEAD_DIM:])


def make_params(key):
    """Deterministic synthetic parameters (normal * 0.02; LN gamma=1, beta=0)."""
    ks = jax.random.split(key, 8)
    n = lambda k, shp: (0.02 * jax.random.normal(k, shp)).astype(jnp.float32)
    zeros = lambda d: jnp.zeros((1, d), jnp.float32)
    ones = lambda d: jnp.ones((1, d), jnp.float32)
    H, I, NHD, HD = HIDDEN, INTERMEDIATE, NUM_HEADS * HEAD_DIM, HEAD_DIM
    return (
        ones(H), zeros(H),                                  # attention_norm
        n(ks[0], (H, NHD)), zeros(NHD),                     # Wq, bq
        n(ks[1], (H, HD)), zeros(HD),                       # Wk, bk  (single KV head)
        n(ks[2], (H, HD)), zeros(HD),                       # Wv, bv
        n(ks[3], (NHD, H)), zeros(H),                       # Wo, bo
        ones(H), zeros(H),                                  # ffn_norm
        n(ks[4], (H, I)), zeros(I),                         # FFN W1, b1
        n(ks[5], (I, H)), zeros(H),                         # FFN W2, b2
    )


def reference(x, params, attention_mask=None):
    """Pure-JAX f32 reference for a correctness check."""
    (ln1g, ln1b, wq, bq, wk, bk, wv, bv, wo, bo,
     ln2g, ln2b, w1, b1, w2, b2) = params
    B, S, H = x.shape
    mask = (jnp.zeros((B, S)) if attention_mask is None else attention_mask)
    xn = _layer_norm(x, ln1g[0], ln1b[0])
    q = xn @ wq + bq[0]
    k = xn @ wk + bk[0]
    v = xn @ wv + bv[0]
    qh = q.reshape(B, S, NUM_HEADS, HEAD_DIM)
    s = jnp.einsum("bqhd,bkd->bhqk", qh, k) / math.sqrt(HEAD_DIM)
    s = s + mask[:, None, None, :]
    p = jax.nn.softmax(s, axis=-1)
    ctx = jnp.einsum("bhqk,bkd->bqhd", p, v).reshape(B, S, NUM_HEADS * HEAD_DIM)
    attn = ctx @ wo + bo[0]
    h1 = x + attn
    hn = _layer_norm(h1, ln2g[0], ln2b[0])
    f = _gelu_exact(hn @ w1 + b1[0]) @ w2 + b2[0]
    return h1 + f, (k, v)


if __name__ == "__main__":
    key = jax.random.PRNGKey(0)
    kx, kp = jax.random.split(key)
    x = jax.random.normal(kx, (BATCH, SEQ, HIDDEN), jnp.float32)
    params = make_params(kp)

    # --- no mask ---
    y, (k, v) = zephyra_layer(x, params, attention_mask=None)
    jax.block_until_ready((y, k, v))
    y_ref, (k_ref, v_ref) = reference(x, params, attention_mask=None)
    # bf16 MXU operands + approx reciprocal -> loosened tolerance vs f32 reference
    assert jnp.allclose(y, y_ref, atol=2e-2, rtol=2e-2), "output mismatch"
    assert jnp.allclose(k, k_ref, atol=2e-2, rtol=2e-2), "present-k mismatch"
    assert jnp.allclose(v, v_ref, atol=2e-2, rtol=2e-2), "present-v mismatch"

    # --- additive key-padding mask path ---
    mask = jnp.zeros((BATCH, SEQ), jnp.float32).at[1, SEQ - 2:].set(-1e9)
    ym, (km, vm) = zephyra_layer(x, params, attention_mask=mask)
    jax.block_until_ready((ym, km, vm))
    ym_ref, _ = reference(x, params, attention_mask=mask)
    assert jnp.allclose(ym, ym_ref, atol=2e-2, rtol=2e-2), "masked output mismatch"

    print("KERNEL_OK")
</pallas_src>

<mosaic_0001>
module attributes {stable_mosaic.version = 11 : i64} {
  func.func @zephyra_layer_kernel(%arg0: memref<16x32xf32, #tpu.memory_space<vmem>>, %arg1: memref<2x8xf32, #tpu.memory_space<vmem>>, %arg2: memref<1x32xf32, #tpu.memory_space<vmem>>, %arg3: memref<1x32xf32, #tpu.memory_space<vmem>>, %arg4: memref<32x48xbf16, #tpu.memory_space<vmem>>, %arg5: memref<1x48xf32, #tpu.memory_space<vmem>>, %arg6: memref<32x32xbf16, #tpu.memory_space<vmem>>, %arg7: memref<1x32xf32, #tpu.memory_space<vmem>>, %arg8: memref<1x32xf32, #tpu.memory_space<vmem>>, %arg9: memref<1x32xf32, #tpu.memory_space<vmem>>, %arg10: memref<32x64xbf16, #tpu.memory_space<vmem>>, %arg11: memref<1x64xf32, #tpu.memory_space<vmem>>, %arg12: memref<64x32xbf16, #tpu.memory_space<vmem>>, %arg13: memref<1x32xf32, #tpu.memory_space<vmem>>, %arg14: memref<16x32xf32, #tpu.memory_space<vmem>>, %arg15: memref<16x16xf32, #tpu.memory_space<vmem>>) attributes {dimension_semantics = [], scalar_prefetch = 0 : i64, scratch_operands = 0 : i64, tpu.core_type = #tpu.core_type<tc>} {
    %c0 = arith.constant 0 : index
    %c0_0 = arith.constant 0 : index
    %0 = vector.load %arg0[%c0, %c0_0] : memref<16x32xf32, #tpu.memory_space<vmem>>, vector<16x32xf32>
    %c0_1 = arith.constant 0 : index
    %c0_2 = arith.constant 0 : index
    %1 = vector.load %arg1[%c0_1, %c0_2] : memref<2x8xf32, #tpu.memory_space<vmem>>, vector<2x8xf32>
    %c0_3 = arith.constant 0 : index
    %c0_4 = arith.constant 0 : index
    %2 = vector.load %arg2[%c0_3, %c0_4] : memref<1x32xf32, #tpu.memory_space<vmem>>, vector<1x32xf32>
    %c0_5 = arith.constant 0 : index
    %c0_6 = arith.constant 0 : index
    %3 = vector.load %arg3[%c0_5, %c0_6] : memref<1x32xf32, #tpu.memory_space<vmem>>, vector<1x32xf32>
    %cst = arith.constant dense<0.000000e+00> : vector<16xf32>
    %4 = vector.multi_reduction <add>, %0, %cst [1] : vector<16x32xf32> to vector<16xf32>
    %5 = vector.shape_cast %4 : vector<16xf32> to vector<16x1xf32>
    %cst_7 = arith.constant 3.200000e+01 : f32
    %6 = vector.broadcast %cst_7 : f32 to vector<16x1xf32>
    %7 = arith.divf %5, %6 : vector<16x1xf32>
    %8 = vector.broadcast %7 : vector<16x1xf32> to vector<16x32xf32>
    %9 = arith.subf %0, %8 : vector<16x32xf32>
    %10 = arith.mulf %9, %9 : vector<16x32xf32>
    %cst_8 = arith.constant dense<0.000000e+00> : vector<16xf32>
    %11 = vector.multi_reduction <add>, %10, %cst_8 [1] : vector<16x32xf32> to vector<16xf32>
    %12 = vector.shape_cast %11 : vector<16xf32> to vector<16x1xf32>
    %cst_9 = arith.constant 3.200000e+01 : f32
    %13 = vector.broadcast %cst_9 : f32 to vector<16x1xf32>
    %14 = arith.divf %12, %13 : vector<16x1xf32>
    %15 = vector.broadcast %7 : vector<16x1xf32> to vector<16x32xf32>
    %16 = arith.subf %0, %15 : vector<16x32xf32>
    %cst_10 = arith.constant 9.99999974E-6 : f32
    %17 = vector.broadcast %cst_10 : f32 to vector<16x1xf32>
    %18 = arith.addf %14, %17 : vector<16x1xf32>
    %19 = math.rsqrt %18 : vector<16x1xf32>
    %20 = vector.broadcast %19 : vector<16x1xf32> to vector<16x32xf32>
    %21 = arith.mulf %16, %20 : vector<16x32xf32>
    %22 = vector.broadcast %2 : vector<1x32xf32> to vector<16x32xf32>
    %23 = arith.mulf %21, %22 : vector<16x32xf32>
    %24 = vector.broadcast %3 : vector<1x32xf32> to vector<16x32xf32>
    %25 = arith.addf %23, %24 : vector<16x32xf32>
    %26 = arith.truncf %25 : vector<16x32xf32> to vector<16x32xbf16>
    %c0_11 = arith.constant 0 : index
    %c0_12 = arith.constant 0 : index
    %27 = vector.load %arg4[%c0_11, %c0_12] : memref<32x48xbf16, #tpu.memory_space<vmem>>, vector<32x48xbf16>
    %cst_13 = arith.constant dense<0.000000e+00> : vector<16x48xf32>
    %28 = tpu.matmul %26, %27, %cst_13 {dimension_numbers = #tpu.dot_dimension_numbers<[1], [0], [0], [1], [0, 0, 1, 1], [], []>} : vector<16x32xbf16>, vector<32x48xbf16>, vector<16x48xf32> -> vector<16x48xf32>
    %c0_14 = arith.constant 0 : index
    %c0_15 = arith.constant 0 : index
    %29 = vector.load %arg5[%c0_14, %c0_15] : memref<1x48xf32, #tpu.memory_space<vmem>>, vector<1x48xf32>
    %30 = vector.broadcast %29 : vector<1x48xf32> to vector<16x48xf32>
    %31 = arith.addf %28, %30 : vector<16x48xf32>
    %32 = vector.extract_strided_slice %31 {offsets = [0, 0], sizes = [16, 32], strides = [1, 1]} : vector<16x48xf32> to vector<16x32xf32>
    %33 = vector.extract_strided_slice %31 {offsets = [0, 32], sizes = [16, 16], strides = [1, 1]} : vector<16x48xf32> to vector<16x16xf32>
    %34 = vector.extract_strided_slice %33 {offsets = [0, 0], sizes = [16, 8], strides = [1, 1]} : vector<16x16xf32> to vector<16x8xf32>
    %35 = vector.extract_strided_slice %33 {offsets = [0, 8], sizes = [16, 8], strides = [1, 1]} : vector<16x16xf32> to vector<16x8xf32>
    %36 = vector.extract_strided_slice %32 {offsets = [0, 0], sizes = [8, 32], strides = [1, 1]} : vector<16x32xf32> to vector<8x32xf32>
    %37 = vector.extract_strided_slice %34 {offsets = [0, 0], sizes = [8, 8], strides = [1, 1]} : vector<16x8xf32> to vector<8x8xf32>
    %38 = arith.truncf %37 : vector<8x8xf32> to vector<8x8xbf16>
    %39 = vector.extract_strided_slice %35 {offsets = [0, 0], sizes = [8, 8], strides = [1, 1]} : vector<16x8xf32> to vector<8x8xf32>
    %40 = arith.truncf %39 : vector<8x8xf32> to vector<8x8xbf16>
    %41 = vector.extract_strided_slice %36 {offsets = [0, 0], sizes = [8, 8], strides = [1, 1]} : vector<8x32xf32> to vector<8x8xf32>
    %42 = vector.extract_strided_slice %36 {offsets = [0, 8], sizes = [8, 8], strides = [1, 1]} : vector<8x32xf32> to vector<8x8xf32>
    %43 = vector.extract_strided_slice %36 {offsets = [0, 16], sizes = [8, 8], strides = [1, 1]} : vector<8x32xf32> to vector<8x8xf32>
    %44 = vector.extract_strided_slice %36 {offsets = [0, 24], sizes = [8, 8], strides = [1, 1]} : vector<8x32xf32> to vector<8x8xf32>
    %45 = tpu.concatenate %41, %42, %43, %44 in 0 : vector<8x8xf32>, vector<8x8xf32>, vector<8x8xf32>, vector<8x8xf32> -> vector<32x8xf32>
    %46 = arith.truncf %45 : vector<32x8xf32> to vector<32x8xbf16>
    %cst_16 = arith.constant dense<0.000000e+00> : vector<32x8xf32>
    %47 = tpu.matmul %46, %38, %cst_16 {dimension_numbers = #tpu.dot_dimension_numbers<[1], [1], [0], [0], [0, 0, 1, 0], [], []>} : vector<32x8xbf16>, vector<8x8xbf16>, vector<32x8xf32> -> vector<32x8xf32>
    %cst_17 = arith.constant 0.353553385 : f32
    %48 = vector.broadcast %cst_17 : f32 to vector<32x8xf32>
    %49 = arith.mulf %47, %48 : vector<32x8xf32>
    %50 = vector.extract_strided_slice %1 {offsets = [0, 0], sizes = [1, 8], strides = [1, 1]} : vector<2x8xf32> to vector<1x8xf32>
    %51 = vector.broadcast %50 : vector<1x8xf32> to vector<32x8xf32>
    %52 = arith.addf %49, %51 : vector<32x8xf32>
    %cst_18 = arith.constant dense<0xFF800000> : vector<32xf32>
    %53 = vector.multi_reduction <maximumf>, %52, %cst_18 [1] : vector<32x8xf32> to vector<32xf32>
    %54 = vector.shape_cast %53 : vector<32xf32> to vector<32x1xf32>
    %55 = vector.broadcast %54 : vector<32x1xf32> to vector<32x8xf32>
    %56 = arith.subf %52, %55 : vector<32x8xf32>
    %57 = math.exp %56 : vector<32x8xf32>
    %cst_19 = arith.constant dense<0.000000e+00> : vector<32xf32>
    %58 = vector.multi_reduction <add>, %57, %cst_19 [1] : vector<32x8xf32> to vector<32xf32>
    %59 = vector.shape_cast %58 : vector<32xf32> to vector<32x1xf32>
    %60 = tpu.reciprocal %59 {approx = true} : vector<32x1xf32> -> vector<32x1xf32>
    %61 = vector.broadcast %60 : vector<32x1xf32> to vector<32x8xf32>
    %62 = arith.mulf %57, %61 : vector<32x8xf32>
    %63 = arith.truncf %62 : vector<32x8xf32> to vector<32x8xbf16>
    %cst_20 = arith.constant dense<0.000000e+00> : vector<32x8xf32>
    %64 = tpu.matmul %63, %40, %cst_20 {dimension_numbers = #tpu.dot_dimension_numbers<[1], [0], [0], [1], [0, 0, 1, 1], [], []>} : vector<32x8xbf16>, vector<8x8xbf16>, vector<32x8xf32> -> vector<32x8xf32>
    %65 = vector.extract_strided_slice %64 {offsets = [0, 0], sizes = [8, 8], strides = [1, 1]} : vector<32x8xf32> to vector<8x8xf32>
    %66 = vector.extract_strided_slice %64 {offsets = [8, 0], sizes = [8, 8], strides = [1, 1]} : vector<32x8xf32> to vector<8x8xf32>
    %67 = vector.extract_strided_slice %64 {offsets = [16, 0], sizes = [8, 8], strides = [1, 1]} : vector<32x8xf32> to vector<8x8xf32>
    %68 = vector.extract_strided_slice %64 {offsets = [24, 0], sizes = [8, 8], strides = [1, 1]} : vector<32x8xf32> to vector<8x8xf32>
    %69 = tpu.concatenate %65, %66, %67, %68 in 1 : vector<8x8xf32>, vector<8x8xf32>, vector<8x8xf32>, vector<8x8xf32> -> vector<8x32xf32>
    %70 = vector.extract_strided_slice %32 {offsets = [8, 0], sizes = [8, 32], strides = [1, 1]} : vector<16x32xf32> to vector<8x32xf32>
    %71 = vector.extract_strided_slice %34 {offsets = [8, 0], sizes = [8, 8], strides = [1, 1]} : vector<16x8xf32> to vector<8x8xf32>
    %72 = arith.truncf %71 : vector<8x8xf32> to vector<8x8xbf16>
    %73 = vector.extract_strided_slice %35 {offsets = [8, 0], sizes = [8, 8], strides = [1, 1]} : vector<16x8xf32> to vector<8x8xf32>
    %74 = arith.truncf %73 : vector<8x8xf32> to vector<8x8xbf16>
    %75 = vector.extract_strided_slice %70 {offsets = [0, 0], sizes = [8, 8], strides = [1, 1]} : vector<8x32xf32> to vector<8x8xf32>
    %76 = vector.extract_strided_slice %70 {offsets = [0, 8], sizes = [8, 8], strides = [1, 1]} : vector<8x32xf32> to vector<8x8xf32>
    %77 = vector.extract_strided_slice %70 {offsets = [0, 16], sizes = [8, 8], strides = [1, 1]} : vector<8x32xf32> to vector<8x8xf32>
    %78 = vector.extract_strided_slice %70 {offsets = [0, 24], sizes = [8, 8], strides = [1, 1]} : vector<8x32xf32> to vector<8x8xf32>
    %79 = tpu.concatenate %75, %76, %77, %78 in 0 : vector<8x8xf32>, vector<8x8xf32>, vector<8x8xf32>, vector<8x8xf32> -> vector<32x8xf32>
    %80 = arith.truncf %79 : vector<32x8xf32> to vector<32x8xbf16>
    %cst_21 = arith.constant dense<0.000000e+00> : vector<32x8xf32>
    %81 = tpu.matmul %80, %72, %cst_21 {dimension_numbers = #tpu.dot_dimension_numbers<[1], [1], [0], [0], [0, 0, 1, 0], [], []>} : vector<32x8xbf16>, vector<8x8xbf16>, vector<32x8xf32> -> vector<32x8xf32>
    %cst_22 = arith.constant 0.353553385 : f32
    %82 = vector.broadcast %cst_22 : f32 to vector<32x8xf32>
    %83 = arith.mulf %81, %82 : vector<32x8xf32>
    %84 = vector.extract_strided_slice %1 {offsets = [1, 0], sizes = [1, 8], strides = [1, 1]} : vector<2x8xf32> to vector<1x8xf32>
    %85 = vector.broadcast %84 : vector<1x8xf32> to vector<32x8xf32>
    %86 = arith.addf %83, %85 : vector<32x8xf32>
    %cst_23 = arith.constant dense<0xFF800000> : vector<32xf32>
    %87 = vector.multi_reduction <maximumf>, %86, %cst_23 [1] : vector<32x8xf32> to vector<32xf32>
    %88 = vector.shape_cast %87 : vector<32xf32> to vector<32x1xf32>
    %89 = vector.broadcast %88 : vector<32x1xf32> to vector<32x8xf32>
    %90 = arith.subf %86, %89 : vector<32x8xf32>
    %91 = math.exp %90 : vector<32x8xf32>
    %cst_24 = arith.constant dense<0.000000e+00> : vector<32xf32>
    %92 = vector.multi_reduction <add>, %91, %cst_24 [1] : vector<32x8xf32> to vector<32xf32>
    %93 = vector.shape_cast %92 : vector<32xf32> to vector<32x1xf32>
    %94 = tpu.reciprocal %93 {approx = true} : vector<32x1xf32> -> vector<32x1xf32>
    %95 = vector.broadcast %94 : vector<32x1xf32> to vector<32x8xf32>
    %96 = arith.mulf %91, %95 : vector<32x8xf32>
    %97 = arith.truncf %96 : vector<32x8xf32> to vector<32x8xbf16>
    %cst_25 = arith.constant dense<0.000000e+00> : vector<32x8xf32>
    %98 = tpu.matmul %97, %74, %cst_25 {dimension_numbers = #tpu.dot_dimension_numbers<[1], [0], [0], [1], [0, 0, 1, 1], [], []>} : vector<32x8xbf16>, vector<8x8xbf16>, vector<32x8xf32> -> vector<32x8xf32>
    %99 = vector.extract_strided_slice %98 {offsets = [0, 0], sizes = [8, 8], strides = [1, 1]} : vector<32x8xf32> to vector<8x8xf32>
    %100 = vector.extract_strided_slice %98 {offsets = [8, 0], sizes = [8, 8], strides = [1, 1]} : vector<32x8xf32> to vector<8x8xf32>
    %101 = vector.extract_strided_slice %98 {offsets = [16, 0], sizes = [8, 8], strides = [1, 1]} : vector<32x8xf32> to vector<8x8xf32>
    %102 = vector.extract_strided_slice %98 {offsets = [24, 0], sizes = [8, 8], strides = [1, 1]} : vector<32x8xf32> to vector<8x8xf32>
    %103 = tpu.concatenate %99, %100, %101, %102 in 1 : vector<8x8xf32>, vector<8x8xf32>, vector<8x8xf32>, vector<8x8xf32> -> vector<8x32xf32>
    %104 = tpu.concatenate %69, %103 in 0 : vector<8x32xf32>, vector<8x32xf32> -> vector<16x32xf32>
    %105 = arith.truncf %104 : vector<16x32xf32> to vector<16x32xbf16>
    %c0_26 = arith.constant 0 : index
    %c0_27 = arith.constant 0 : index
    %106 = vector.load %arg6[%c0_26, %c0_27] : memref<32x32xbf16, #tpu.memory_space<vmem>>, vector<32x32xbf16>
    %cst_28 = arith.constant dense<0.000000e+00> : vector<16x32xf32>
    %107 = tpu.matmul %105, %106, %cst_28 {dimension_numbers = #tpu.dot_dimension_numbers<[1], [0], [0], [1], [0, 0, 1, 1], [], []>} : vector<16x32xbf16>, vector<32x32xbf16>, vector<16x32xf32> -> vector<16x32xf32>
    %c0_29 = arith.constant 0 : index
    %c0_30 = arith.constant 0 : index
    %108 = vector.load %arg7[%c0_29, %c0_30] : memref<1x32xf32, #tpu.memory_space<vmem>>, vector<1x32xf32>
    %109 = vector.broadcast %108 : vector<1x32xf32> to vector<16x32xf32>
    %110 = arith.addf %107, %109 : vector<16x32xf32>
    %111 = arith.addf %0, %110 : vector<16x32xf32>
    %c0_31 = arith.constant 0 : index
    %c0_32 = arith.constant 0 : index
    %112 = vector.load %arg8[%c0_31, %c0_32] : memref<1x32xf32, #tpu.memory_space<vmem>>, vector<1x32xf32>
    %c0_33 = arith.constant 0 : index
    %c0_34 = arith.constant 0 : index
    %113 = vector.load %arg9[%c0_33, %c0_34] : memref<1x32xf32, #tpu.memory_space<vmem>>, vector<1x32xf32>
    %cst_35 = arith.constant dense<0.000000e+00> : vector<16xf32>
    %114 = vector.multi_reduction <add>, %111, %cst_35 [1] : vector<16x32xf32> to vector<16xf32>
    %115 = vector.shape_cast %114 : vector<16xf32> to vector<16x1xf32>
    %cst_36 = arith.constant 3.200000e+01 : f32
    %116 = vector.broadcast %cst_36 : f32 to vector<16x1xf32>
    %117 = arith.divf %115, %116 : vector<16x1xf32>
    %118 = vector.broadcast %117 : vector<16x1xf32> to vector<16x32xf32>
    %119 = arith.subf %111, %118 : vector<16x32xf32>
    %120 = arith.mulf %119, %119 : vector<16x32xf32>
    %cst_37 = arith.constant dense<0.000000e+00> : vector<16xf32>
    %121 = vector.multi_reduction <add>, %120, %cst_37 [1] : vector<16x32xf32> to vector<16xf32>
    %122 = vector.shape_cast %121 : vector<16xf32> to vector<16x1xf32>
    %cst_38 = arith.constant 3.200000e+01 : f32
    %123 = vector.broadcast %cst_38 : f32 to vector<16x1xf32>
    %124 = arith.divf %122, %123 : vector<16x1xf32>
    %125 = vector.broadcast %117 : vector<16x1xf32> to vector<16x32xf32>
    %126 = arith.subf %111, %125 : vector<16x32xf32>
    %cst_39 = arith.constant 9.99999974E-6 : f32
    %127 = vector.broadcast %cst_39 : f32 to vector<16x1xf32>
    %128 = arith.addf %124, %127 : vector<16x1xf32>
    %129 = math.rsqrt %128 : vector<16x1xf32>
    %130 = vector.broadcast %129 : vector<16x1xf32> to vector<16x32xf32>
    %131 = arith.mulf %126, %130 : vector<16x32xf32>
    %132 = vector.broadcast %112 : vector<1x32xf32> to vector<16x32xf32>
    %133 = arith.mulf %131, %132 : vector<16x32xf32>
    %134 = vector.broadcast %113 : vector<1x32xf32> to vector<16x32xf32>
    %135 = arith.addf %133, %134 : vector<16x32xf32>
    %136 = arith.truncf %135 : vector<16x32xf32> to vector<16x32xbf16>
    %c0_40 = arith.constant 0 : index
    %c0_41 = arith.constant 0 : index
    %137 = vector.load %arg10[%c0_40, %c0_41] : memref<32x64xbf16, #tpu.memory_space<vmem>>, vector<32x64xbf16>
    %cst_42 = arith.constant dense<0.000000e+00> : vector<16x64xf32>
    %138 = tpu.matmul %136, %137, %cst_42 {dimension_numbers = #tpu.dot_dimension_numbers<[1], [0], [0], [1], [0, 0, 1, 1], [], []>} : vector<16x32xbf16>, vector<32x64xbf16>, vector<16x64xf32> -> vector<16x64xf32>
    %c0_43 = arith.constant 0 : index
    %c0_44 = arith.constant 0 : index
    %139 = vector.load %arg11[%c0_43, %c0_44] : memref<1x64xf32, #tpu.memory_space<vmem>>, vector<1x64xf32>
    %140 = vector.broadcast %139 : vector<1x64xf32> to vector<16x64xf32>
    %141 = arith.addf %138, %140 : vector<16x64xf32>
    %cst_45 = arith.constant 5.000000e-01 : f32
    %142 = vector.broadcast %cst_45 : f32 to vector<16x64xf32>
    %143 = arith.mulf %142, %141 : vector<16x64xf32>
    %cst_46 = arith.constant 0.707106769 : f32
    %144 = vector.broadcast %cst_46 : f32 to vector<16x64xf32>
    %145 = arith.mulf %141, %144 : vector<16x64xf32>
    %146 = math.erf %145 : vector<16x64xf32>
    %cst_47 = arith.constant 1.000000e+00 : f32
    %147 = vector.broadcast %cst_47 : f32 to vector<16x64xf32>
    %148 = arith.addf %147, %146 : vector<16x64xf32>
    %149 = arith.mulf %143, %148 : vector<16x64xf32>
    %150 = arith.truncf %149 : vector<16x64xf32> to vector<16x64xbf16>
    %c0_48 = arith.constant 0 : index
    %c0_49 = arith.constant 0 : index
    %151 = vector.load %arg12[%c0_48, %c0_49] : memref<64x32xbf16, #tpu.memory_space<vmem>>, vector<64x32xbf16>
    %cst_50 = arith.constant dense<0.000000e+00> : vector<16x32xf32>
    %152 = tpu.matmul %150, %151, %cst_50 {dimension_numbers = #tpu.dot_dimension_numbers<[1], [0], [0], [1], [0, 0, 1, 1], [], []>} : vector<16x64xbf16>, vector<64x32xbf16>, vector<16x32xf32> -> vector<16x32xf32>
    %c0_51 = arith.constant 0 : index
    %c0_52 = arith.constant 0 : index
    %153 = vector.load %arg13[%c0_51, %c0_52] : memref<1x32xf32, #tpu.memory_space<vmem>>, vector<1x32xf32>
    %154 = vector.broadcast %153 : vector<1x32xf32> to vector<16x32xf32>
    %155 = arith.addf %152, %154 : vector<16x32xf32>
    %156 = arith.addf %111, %155 : vector<16x32xf32>
    %c0_53 = arith.constant 0 : index
    %c0_54 = arith.constant 0 : index
    %157 = vector.load %arg14[%c0_53, %c0_54] : memref<16x32xf32, #tpu.memory_space<vmem>>, vector<16x32xf32>
    tpu.vector_store %arg14[%c0_53, %c0_54], %156 {strides = array<i32>} : memref<16x32xf32, #tpu.memory_space<vmem>>, vector<16x32xf32>,
    %c0_55 = arith.constant 0 : index
    %c0_56 = arith.constant 0 : index
    %158 = vector.load %arg15[%c0_55, %c0_56] : memref<16x16xf32, #tpu.memory_space<vmem>>, vector<16x16xf32>
    tpu.vector_store %arg15[%c0_55, %c0_56], %33 {strides = array<i32>} : memref<16x16xf32, #tpu.memory_space<vmem>>, vector<16x16xf32>,
    return
  }
}

</mosaic_0001>

<bundles_post_ra>
// kernel: tpu_custom_call.1
= control target key start
LH: loop header
LB: loop body
LE: loop exit
PB: predicated region body
PF: predicated region fallthrough
CT: control target
= control target key end

     0   :  { %21 = vsyncpa [#allocation3], 0  ;;  %s1585_s0 = inlined_call_operand.vmem [shape: f32[16,32], index: 0, kind: input, shape index: {}]   ;;  %s1586_s1 = inlined_call_operand.hbm [shape: f32[2,8], index: 1, kind: input, shape index: {}]   ;;  %s1587_s2 = inlined_call_operand.vmem [shape: f32[1,32], index: 2, kind: input, shape index: {}]   ;;  %s1588_s3 = inlined_call_operand.vmem [shape: f32[1,32], index: 3, kind: input, shape index: {}]   ;;  %s1589_s4 = inlined_call_operand.vmem [shape: bf16[32,48], index: 4, kind: input, shape index: {}]   ;;  %s1590_s5 = inlined_call_operand.vmem [shape: f32[1,48], index: 5, kind: input, shape index: {}]   ;;  %s1591_s6 = inlined_call_operand.vmem [shape: bf16[32,32], index: 6, kind: input, shape index: {}]   ;;  %s1592_s7 = inlined_call_operand.vmem [shape: f32[1,32], index: 7, kind: input, shape index: {}]   ;;  %s1593_s8 = inlined_call_operand.vmem [shape: f32[1,32], index: 8, kind: input, shape index: {}]   ;;  %s1594_s9 = inlined_call_operand.hbm [shape: f32[1,32], index: 9, kind: input, shape index: {}]   ;;  %s1595_s10 = inlined_call_operand.hbm [shape: bf16[32,64], index: 10, kind: input, shape index: {}]   ;;  %s1596_s11 = inlined_call_operand.hbm [shape: f32[1,64], index: 11, kind: input, shape index: {}]   ;;  %s1597_s12 = inlined_call_operand.vmem [shape: bf16[64,32], index: 12, kind: input, shape index: {}]   ;;  %s1598_s13 = inlined_call_operand.vmem [shape: f32[1,32], index: 13, kind: input, shape index: {}]   ;;  %s1599_s14 = inlined_call_operand.hbm [shape: f32[16,32], index: 14, kind: output, shape index: {0}]   ;;  %s1600_s15 = inlined_call_operand.hbm [shape: f32[16,16], index: 15, kind: output, shape index: {1}]  }
   0x1   :  { %22 = vsyncpa [#allocation6], 0 }
   0x2   :  { %23 = vsyncpa [#allocation9], 0 }
   0x3   :  { %24 = vsyncpa [#allocation4], 0 }
   0x4   :  { %25 = vsyncpa [#allocation12], 0  ;;  %s1298_s18 = smov [#allocation5]   ;;  %s1299_s20 = smov [#allocation2]  }
   0x5   :  { %s58_s19 = sshll.u32 %s1298_s18, 4  ;;  %s34_s21 = sshll.u32 %s1299_s20, 4  ;;  %s59_s19 = int_to_ptr.vmem [resolvable:$true] %s58_s19  ;;  %s35_s21 = int_to_ptr.vmem [resolvable:$true] %s34_s21 }
   0x6   :  { %s1176_s22 = scalar_lea.vmem %s59_s19, 16  ;;  %s1180_s23 = scalar_lea.vmem %s59_s19, 32 }
   0x7   :  { %p1177_p0 = scmp.ne.s32.totalorder %s59_s19, %s1176_s22  ;;  %p1181_p1 = scmp.lt.s32.totalorder %s59_s19, %s59_s19 }
   0x8   :  { %p1182_p2 = scmp.lt.s32.totalorder %s1180_s23, %s1176_s22 }
   0xa   :  { %p1183_p3 = por %p1182_p2, %p1181_p1 }
   0xc   :  { %p1184_p4 = pnand %p1183_p3, %p1177_p0 }
   0xe   :  { %1187 = shalt.err (!%p1184_p4)
}
   0xf   :  { %61 = dma.hbm_to_vmem [thread:$0]  %s1594_s9, 16, %s59_s19, [#allocation6]  }
  0x10   :  { %s1196_s26 = scalar_lea.vmem %s35_s21, 32  ;;  %p1201_p6 = scmp.lt.s32.totalorder %s35_s21, %s35_s21 }
  0x11   :  { %p1197_p5 = scmp.ne.s32.totalorder %s35_s21, %s1196_s26  ;;  %p1202_p7 = scmp.lt.s32.totalorder %s1196_s26, %s1196_s26 }
  0x13   :  { %p1203_p8 = por %p1202_p7, %p1201_p6 }
  0x15   :  { %p1204_p9 = pnand %p1203_p8, %p1197_p5 }
  0x17   :  { %1207 = shalt.err (!%p1204_p9)
}
  0x18   :  { %37 = dma.hbm_to_vmem [thread:$0]  %s1586_s1, 32, %s35_s21, [#allocation3]  }
  0x19   :  { %s1300_s29 = smov [#allocation7]  }
  0x1a   :  { %s67_s30 = sshll.u32 %s1300_s29, 4  ;;  %s68_s30 = int_to_ptr.vmem [resolvable:$true] %s67_s30 }
  0x1b   :  { %s1216_s16 = scalar_lea.vmem %s68_s30, 256  ;;  %p1221_p11 = scmp.lt.s32.totalorder %s68_s30, %s68_s30 }
  0x1c   :  { %p1217_p10 = scmp.ne.s32.totalorder %s68_s30, %s1216_s16  ;;  %p1222_p12 = scmp.lt.s32.totalorder %s1216_s16, %s1216_s16 }
  0x1e   :  { %p1223_p13 = por %p1222_p12, %p1221_p11 }
  0x20   :  { %p1224_p0 = pnand %p1223_p13, %p1217_p10 }
  0x22   :  { %1227 = shalt.err (!%p1224_p0)
}
  0x23   :  { %s1301_s9 = smov 64   ;;  %s1302_s17 = smov 4  }
  0x24   :  { %73 = dma.hbm_to_vmem [thread:$0]  %s1595_s10, 256, %s68_s30, [#allocation6], %s1301_s9, %s1301_s9, %s1302_s17  }
  0x25   :  { %s1303_s20 = smov [#allocation8]  }
  0x26   :  { %s80_s22 = sshll.u32 %s1303_s20, 4  ;;  %s81_s22 = int_to_ptr.vmem [resolvable:$true] %s80_s22 }
  0x27   :  { %s1236_s1 = scalar_lea.vmem %s81_s22, 16  ;;  %s1240_s21 = scalar_lea.vmem %s81_s22, 32 }
  0x28   :  { %p1237_p1 = scmp.ne.s32.totalorder %s81_s22, %s1236_s1  ;;  %p1241_p2 = scmp.lt.s32.totalorder %s81_s22, %s81_s22 }
  0x29   :  { %p1242_p3 = scmp.lt.s32.totalorder %s1240_s21, %s1236_s1 }
  0x2b   :  { %p1243_p4 = por %p1242_p3, %p1241_p2 }
  0x2d   :  { %p1244_p5 = pnand %p1243_p4, %p1237_p1 }
  0x2f   :  { %1247 = shalt.err (!%p1244_p5)
}
  0x30   :  { %83 = dma.hbm_to_vmem [thread:$0]  %s1596_s11, 16, %s81_s22, [#allocation9]  }
  0x31   :  { %1288 = dma.done.wait [#allocation3], 32  }
  0x32   :  { %1289 = vsyncadd [#allocation3], 4294967264 }
  0x33   :  { %1290 = dma.done.wait [#allocation6], 272  }
  0x34   :  { %1291 = vsyncadd [#allocation6], 4294967024 }
  0x35   :  { %1292 = dma.done.wait [#allocation9], 16  }
  0x36   :  { %1293 = vsyncadd [#allocation9], 4294967280  ;;  %vm106_vm0 = vcmask 261120   ;;  %v1412_v0 = vld [vmem:[%s1585_s0] sm:$0xff]  ;;  %v1417_v1 = vld [vmem:[%s1585_s0 + $0x8] sm:$0xff]  ;;  %v1304_v15 = vmov 0.0   ;;  %v297_v57 = vlaneseq }
  0x37   :  { %v107_v2 = vsel %vm106_vm0, %v1412_v0, 0.0  ;;  %v110_v3 = vsel %vm106_vm0, %v1417_v1, 0.0  ;;  %v1114_v14 = vld [vmem:[%s1589_s4 + $0x8] sm:$0xff]   ;;  %1016 = vmatprep.subr.bf16.mxu0 %v1304_v15  ;;  %vm1305_vm1 = vmmov 0   ;;  %v1115_v16 = vld [vmem:[%s1589_s4] sm:$0xff]   ;;  %s1309_s19 = smov 104  }
  0x38   :  { %108 = vadd.xlane.f32.xlu0 %v107_v2  ;;  %1020 = vmatprep.mubr.msk.bf16.mxu0 %vm1305_vm1, %v1304_v15  ;;  %v960_v25 = vld [vmem:[%s1587_s2] ss:$0 sm:$0xff]  ;;  %s1306_s2 = smov 120   ;;  %vm234_vm2 = vcmask 64512   ;;  %v298_v58 = vshrl.u32 %v297_v57, 7  ;;  %s1310_s20 = smov 88  }
  0x39   :  { %1017 = vmatpush3.bf16.msra.mxu0 %v1114_v14  ;;  %v961_v29 = vld [vmem:[%s1588_s3] ss:$0 sm:$0xff]  ;;  %s1307_s3 = smov 96   ;;  %vm359_vm3 = vcmask 1043456   ;;  %s1311_s24 = smov 24   ;;  %vm425_vm4 = vcmask 130048  }
  0x3a   :  { %1018 = vmatprep.subr.bf16.mxu0 %v1304_v15  ;;  %v962_v34 = vld [vmem:[%s1590_s5] ss:$0 sm:$0xff]  ;;  %s1308_s5 = smov 112   ;;  %v299_v59 = vsub.s32 0, %v298_v58  ;;  %s1312_s10 = smov 8   ;;  %vm427_vm5 = vcmask 195584  }
  0x3b   :  { %v103_v61 = vld [vmem:[#allocation2] sm:$0x3]  ;;  %s1313_s25 = smov 16   ;;  %vm868_vm6 = vcmask 523264  }
  0x3c   :  { %111 = vadd.xlane.f32.xlu0 %v110_v3  ;;  %v300_v3 = vrot.slane %v103_v61, %v299_v59 }
  0x3d   :  { %1019 = vmatpush3.bf16.msra.mxu0 %v1115_v16 }
  0xc1   :  { %v109_v4 = vpop.xlane.xlu0 %108 }
  0xc2   :  { %v114_v5 = vmul.f32 0.03125, %v109_v4 }
  0xc4   :  { %v116_v6 = vsub.f32 %v1412_v0, %v114_v5 }
  0xc5   :  { %v112_v7 = vpop.xlane.xlu0 %111 }
  0xc6   :  { %v115_v8 = vmul.f32 0.03125, %v112_v7  ;;  %v118_v9 = vmul.f32 %v116_v6, %v116_v6 }
  0xc8   :  { %v117_v10 = vsub.f32 %v1417_v1, %v115_v8  ;;  %v120_v11 = vsel %vm106_vm0, %v118_v9, 0.0 }
  0xc9   :  { %121 = vadd.xlane.f32.xlu1 %v120_v11 }
  0xca   :  { %v119_v12 = vmul.f32 %v117_v10, %v117_v10 }
  0xcc   :  { %v123_v13 = vsel %vm106_vm0, %v119_v12, 0.0 }
  0xcd   :  { %124 = vadd.xlane.f32.xlu1 %v123_v13  ;;  %v509_v13 = vsub.s32 1, %v298_v58 }
 0x152   :  { %v122_v17 = vpop.xlane.xlu1 %121 }
 0x153   :  { %v126_v18 = vmul.f32 0.03125, %v122_v17 }
 0x155   :  { %v128_v19 = vadd.f32 1e-05, %v126_v18 }
 0x156   :  { %v125_v20 = vpop.xlane.xlu1 %124 }
 0x157   :  { %1124 = vrsqrt.f32 %v128_v19  ;;  %v127_v21 = vmul.f32 0.03125, %v125_v20 }
 0x159   :  { %v129_v22 = vadd.f32 1e-05, %v127_v21  ;;  %v510_v21 = vrot.slane %v103_v61, %v509_v13 }
 0x15b   :  { %1126 = vrsqrt.f32 %v129_v22 }
 0x164   :  { %v1125_v23 = vpop.eup %1124 }
 0x165   :  { %v132_v24 = vmul.f32 %v1125_v23, %v116_v6 }
 0x167   :  { %v140_v28 = vmul.f32 %v960_v25, %v132_v24 }
 0x168   :  { %v1127_v26 = vpop.eup %1126 }
 0x169   :  { %v133_v27 = vmul.f32 %v1127_v26, %v117_v10  ;;  %v148_v31 = vadd.f32 %v961_v29, %v140_v28 }
 0x16b   :  { %v141_v30 = vmul.f32 %v960_v25, %v133_v27 }
 0x16d   :  { %v149_v32 = vadd.f32 %v961_v29, %v141_v30 }
 0x16f   :  { %v150_v33 = vpack.c.bf16 %v149_v32, %v148_v31 }
 0x171   :  { %1021 = vmatmul.mubr.msk.bf16.vlgmr.msra.gmra.mxu0 %vm106_vm0, %v150_v33 }
 0x231   :  { %v211_v35 = vpop.f32.mrf.mxu0 }
 0x232   :  { %v1447_v36 = vadd.f32 %v962_v34, %v211_v35 }
 0x233   :  { %v1022_v37 = vpop.f32.mrf.mxu0 }
 0x234   :  { %220 = vrot.lane.b32.xlu1 %v1447_v36, %s1306_s2  ;;  %v1452_v38 = vpack.c.bf16 %v1447_v36, %v1447_v36 }
 0x235   :  { %v214_v39 = vpop.f32.mrf.mxu0 }
 0x236   :  { %v1454_v40 = vadd.f32 %v962_v34, %v214_v39  ;;  %232 = vrot.lane.b32.xlu0 %v1452_v38, %s1307_s3 }
 0x237   :  { %v1023_v41 = vpop.f32.mrf.mxu0 }
 0x238   :  { %223 = vrot.lane.b32.xlu1 %v1447_v36, %s1308_s5  ;;  %v1461_v42 = vpack.c.bf16 %v1454_v40, %v1454_v40 }
 0x23a   :  { %443 = vrot.lane.b32.xlu0 %v1461_v42, %s1307_s3 }
 0x23c   :  { %226 = vrot.lane.b32.xlu1 %v1447_v36, %s1309_s19 }
 0x23e   :  { %434 = vrot.lane.b32.xlu0 %v1454_v40, %s1308_s5 }
 0x240   :  { %431 = vrot.lane.b32.xlu1 %v1454_v40, %s1306_s2 }
 0x244   :  { %437 = vrot.lane.b32.xlu1 %v1454_v40, %s1309_s19 }
 0x2a6   :  { %v221_v43 = vpop.permute.xlu1 %220 }
 0x2a7   :  { %v229_v44 = vpack.c.bf16 %v221_v43, %v1447_v36 }
 0x2a8   :  { %v233_v45 = vpop.permute.xlu0 %232 }
 0x2a9   :  { %1076 = vmatprep.subr.msk.bf16.mxu1 %vm234_vm2, %v233_v45  ;;  %1026 = vmatprep.mubr.msk.bf16.mxu1 %vm234_vm2, %v229_v44  ;;  %v242_v46 = vsel %vm234_vm2, %v233_v45, 0 }
 0x2aa   :  { %v224_v47 = vpop.permute.xlu1 %223  ;;  %1025 = vmatpush3.bf16.xpose.msra.mxu1 %v242_v46 }
 0x2ac   :  { %v444_v48 = vpop.permute.xlu0 %443 }
 0x2ad   :  { %1078 = vmatprep.subr.msk.bf16.mxu1 %vm234_vm2, %v444_v48  ;;  %v452_v51 = vsel %vm234_vm2, %v444_v48, 0 }
 0x2ae   :  { %v227_v49 = vpop.permute.xlu1 %226 }
 0x2af   :  { %v230_v50 = vpack.c.bf16 %v227_v49, %v224_v47 }
 0x2b0   :  { %v435_v54 = vpop.permute.xlu0 %434 }
 0x2b1   :  { %1027 = vmatmul.mubr.msk.bf16.vlgmr.msra.gmra.mxu1 %vm234_vm2, %v230_v50 }
 0x2b2   :  { %v432_v52 = vpop.permute.xlu1 %431  ;;  %1037 = vmatpush3.bf16.xpose.msra.mxu1 %v452_v51 }
 0x2b3   :  { %v440_v53 = vpack.c.bf16 %v432_v52, %v1454_v40  ;;  %1048 = vmatprep.subr.bf16.mxu1 %v1304_v15 }
 0x2b5   :  { %1038 = vmatprep.mubr.msk.bf16.mxu1 %vm234_vm2, %v440_v53 }
 0x2b6   :  { %v438_v55 = vpop.permute.xlu1 %437 }
 0x2b7   :  { %v441_v56 = vpack.c.bf16 %v438_v55, %v435_v54 }
 0x2b9   :  { %1039 = vmatmul.mubr.msk.bf16.vlgmr.msra.gmra.mxu1 %vm234_vm2, %v441_v56 }
 0x2ba   :  { %1052 = vmatprep.mubr.msk.bf16.mxu1 %vm1305_vm1, %v1304_v15 }
 0x371   :  { %v1028_v60 = vpop.f32.mrf.mxu1 }
 0x372   :  { %v295_v63 = vmul.f32 0.35355338, %v1028_v60 }
 0x373   :  { %v278_v62 = vpop.f32.mrf.mxu1 }
 0x374   :  { %v293_v2 = vmul.f32 0.35355338, %v278_v62  ;;  %v303_v10 = vadd.f32 %v300_v3, %v295_v63 }
 0x375   :  { %v1029_v4 = vpop.f32.mrf.mxu1 }
 0x376   :  { %v301_v5 = vadd.f32 %v300_v3, %v293_v2  ;;  %v296_v7 = vmul.f32 0.35355338, %v1029_v4  ;;  %v311_v18 = vsel %vm234_vm2, %v303_v10, -inf }
 0x377   :  { %v281_v6 = vpop.f32.mrf.mxu1 }
 0x378   :  { %v294_v8 = vmul.f32 0.35355338, %v281_v6  ;;  %v305_v9 = vsel %vm234_vm2, %v301_v5, -inf  ;;  %v304_v19 = vadd.f32 %v300_v3, %v296_v7 }
 0x379   :  { %306 = vmax.xlane.f32.xlu0 %v305_v9  ;;  %v1040_v11 = vpop.f32.mrf.mxu1 }
 0x37a   :  { %v302_v12 = vadd.f32 %v300_v3, %v294_v8  ;;  %v505_v22 = vmul.f32 0.35355338, %v1040_v11  ;;  %v314_v26 = vsel %vm234_vm2, %v304_v19, -inf }
 0x37b   :  { %v488_v14 = vpop.f32.mrf.mxu1 }
 0x37c   :  { %v503_v16 = vmul.f32 0.35355338, %v488_v14  ;;  %v308_v17 = vsel %vm234_vm2, %v302_v12, -inf  ;;  %v513_v31 = vadd.f32 %v510_v21, %v505_v22 }
 0x37d   :  { %309 = vmax.xlane.f32.xlu1 %v308_v17  ;;  %312 = vmax.xlane.f32.xlu0 %v311_v18  ;;  %v1041_v20 = vpop.f32.mrf.mxu1 }
 0x37e   :  { %v506_v24 = vmul.f32 0.35355338, %v1041_v20  ;;  %v511_v27 = vadd.f32 %v510_v21, %v503_v16  ;;  %v521_v33 = vsel %vm234_vm2, %v513_v31, -inf }
 0x37f   :  { %v491_v23 = vpop.f32.mrf.mxu1 }
 0x380   :  { %v504_v25 = vmul.f32 0.35355338, %v491_v23  ;;  %v515_v29 = vsel %vm234_vm2, %v511_v27, -inf  ;;  %v514_v32 = vadd.f32 %v510_v21, %v506_v24 }
 0x381   :  { %315 = vmax.xlane.f32.xlu0 %v314_v26 }
 0x382   :  { %v512_v28 = vadd.f32 %v510_v21, %v504_v25  ;;  %v524_v34 = vsel %vm234_vm2, %v514_v32, -inf }
 0x384   :  { %v518_v30 = vsel %vm234_vm2, %v512_v28, -inf }
 0x385   :  { %516 = vmax.xlane.f32.xlu0 %v515_v29  ;;  %519 = vmax.xlane.f32.xlu1 %v518_v30 }
 0x389   :  { %522 = vmax.xlane.f32.xlu0 %v521_v33  ;;  %525 = vmax.xlane.f32.xlu1 %v524_v34 }
 0x402   :  { %v307_v35 = vpop.xlane.xlu0 %306 }
 0x403   :  { %v317_v37 = vsub.f32 %v301_v5, %v307_v35 }
 0x405   :  { %v321_v46 = vmul.f32 1.442695, %v317_v37 }
 0x406   :  { %v310_v39 = vpop.xlane.xlu1 %309  ;;  %v313_v41 = vpop.xlane.xlu0 %312 }
 0x407   :  { %v319_v43 = vsub.f32 %v303_v10, %v313_v41  ;;  %v318_v44 = vsub.f32 %v302_v12, %v310_v39 }
 0x409   :  { %v325_v45 = vmul.f32 1.442695, %v319_v43  ;;  %v323_v49 = vmul.f32 1.442695, %v318_v44 }
 0x40a   :  { %v316_v47 = vpop.xlane.xlu0 %315 }
 0x40b   :  { %v320_v48 = vsub.f32 %v304_v19, %v316_v47  ;;  %1128 = vpow2.f32 %v325_v45 }
 0x40c   :  { %1130 = vpow2.f32 %v321_v46 }
 0x40d   :  { %v327_v50 = vmul.f32 1.442695, %v320_v48 }
 0x40e   :  { %v520_v51 = vpop.xlane.xlu1 %519  ;;  %v517_v52 = vpop.xlane.xlu0 %516 }
 0x40f   :  { %1132 = vpow2.f32 %v327_v50  ;;  %v528_v53 = vsub.f32 %v512_v28, %v520_v51  ;;  %v527_v54 = vsub.f32 %v511_v27, %v517_v52 }
 0x410   :  { %1134 = vpow2.f32 %v323_v49 }
 0x411   :  { %v533_v59 = vmul.f32 1.442695, %v528_v53  ;;  %v531_v62 = vmul.f32 1.442695, %v527_v54 }
 0x412   :  { %v526_v55 = vpop.xlane.xlu1 %525  ;;  %v523_v56 = vpop.xlane.xlu0 %522 }
 0x413   :  { %v530_v57 = vsub.f32 %v514_v32, %v526_v55  ;;  %v529_v58 = vsub.f32 %v513_v31, %v523_v56  ;;  %v1116_v56 = vld [vmem:[%s1591_s6 + $0x8] sm:$0xff]  }
 0x414   :  { %1049 = vmatpush3.bf16.msra.mxu1 %v1116_v56 }
 0x415   :  { %v537_v60 = vmul.f32 1.442695, %v530_v57  ;;  %v535_v61 = vmul.f32 1.442695, %v529_v58  ;;  %1050 = vmatprep.subr.bf16.mxu1 %v1304_v15  ;;  %v1117_v58 = vld [vmem:[%s1591_s6] sm:$0xff]  }
 0x417   :  { %1136 = vpow2.f32 %v537_v60 }
 0x418   :  { %1138 = vpow2.f32 %v535_v61  ;;  %v1129_v63 = vpop.eup %1128  ;;  %1051 = vmatpush3.bf16.msra.mxu1 %v1117_v58 }
 0x419   :  { %1140 = vpow2.f32 %v533_v59  ;;  %v335_v2 = vsel %vm234_vm2, %v1129_v63, 0.0  ;;  %v1131_v3 = vpop.eup %1130  ;;  %1064 = vmatprep.subr.bf16.mxu1 %v1304_v15 }
 0x41a   :  { %1142 = vpow2.f32 %v531_v62  ;;  %336 = vadd.xlane.f32.xlu0 %v335_v2  ;;  %v329_v7 = vsel %vm234_vm2, %v1131_v3, 0.0 }
 0x41c   :  { %v1133_v4 = vpop.eup %1132 }
 0x41d   :  { %v338_v5 = vsel %vm234_vm2, %v1133_v4, 0.0  ;;  %v1135_v6 = vpop.eup %1134 }
 0x41e   :  { %339 = vadd.xlane.f32.xlu1 %v338_v5  ;;  %330 = vadd.xlane.f32.xlu0 %v329_v7  ;;  %v332_v8 = vsel %vm234_vm2, %v1135_v6, 0.0 }
 0x422   :  { %333 = vadd.xlane.f32.xlu1 %v332_v8 }
 0x424   :  { %v1137_v9 = vpop.eup %1136 }
 0x425   :  { %v1139_v10 = vpop.eup %1138  ;;  %v548_v11 = vsel %vm234_vm2, %v1137_v9, 0.0 }
 0x426   :  { %v1141_v12 = vpop.eup %1140  ;;  %549 = vadd.xlane.f32.xlu1 %v548_v11  ;;  %v545_v13 = vsel %vm234_vm2, %v1139_v10, 0.0 }
 0x427   :  { %v1143_v14 = vpop.eup %1142  ;;  %546 = vadd.xlane.f32.xlu0 %v545_v13  ;;  %v542_v16 = vsel %vm234_vm2, %v1141_v12, 0.0 }
 0x428   :  { %v539_v17 = vsel %vm234_vm2, %v1143_v14, 0.0 }
 0x42a   :  { %543 = vadd.xlane.f32.xlu1 %v542_v16 }
 0x42b   :  { %540 = vadd.xlane.f32.xlu0 %v539_v17 }
 0x43b   :  { %561 = vrot.lane.b32.xlu1 %v1461_v42, %s1310_s20 }
 0x441   :  { %351 = vrot.lane.b32.xlu0 %v1452_v38, %s1310_s20 }
 0x4a3   :  { %v337_v18 = vpop.xlane.xlu0 %336 }
 0x4a7   :  { %v340_v19 = vpop.xlane.xlu1 %339  ;;  %v331_v20 = vpop.xlane.xlu0 %330 }
 0x4a8   :  { %1144 = vrcp.f32 %v340_v19 }
 0x4a9   :  { %1146 = vrcp.f32 %v331_v20  ;;  %v974_v20 = vld [vmem:[%s1592_s7] ss:$0 sm:$0xff] }
 0x4aa   :  { %1148 = vrcp.f32 %v337_v18 }
 0x4ab   :  { %v334_v21 = vpop.xlane.xlu1 %333 }
 0x4ac   :  { %1150 = vrcp.f32 %v334_v21 }
 0x4af   :  { %v550_v22 = vpop.xlane.xlu1 %549 }
 0x4b0   :  { %v547_v23 = vpop.xlane.xlu0 %546  ;;  %1152 = vrcp.f32 %v550_v22 }
 0x4b1   :  { %1154 = vrcp.f32 %v547_v23 }
 0x4b3   :  { %v544_v24 = vpop.xlane.xlu1 %543 }
 0x4b4   :  { %1156 = vrcp.f32 %v544_v24  ;;  %v541_v25 = vpop.xlane.xlu0 %540 }
 0x4b5   :  { %1158 = vrcp.f32 %v541_v25  ;;  %v1145_v26 = vpop.eup %1144 }
 0x4b6   :  { %v1147_v42 = vpop.eup %1146  ;;  %v348_v30 = vmul.f32 %v1145_v26, %v1133_v4 }
 0x4b7   :  { %v1149_v38 = vpop.eup %1148  ;;  %v562_v31 = vpop.permute.xlu1 %561  ;;  %v345_v32 = vmul.f32 %v1147_v42, %v1131_v3 }
 0x4b8   :  { %v352_v27 = vpop.permute.xlu0 %351  ;;  %v347_v34 = vmul.f32 %v1149_v38, %v1129_v63  ;;  %v570_v43 = vsel %vm359_vm3, %v562_v31, 0 }
 0x4b9   :  { %v1151_v28 = vpop.eup %1150  ;;  %v361_v29 = vsel %vm359_vm3, %v352_v27, 0  ;;  %1077 = vmatprep.subr.msk.bf16.mxu0 %vm359_vm3, %v352_v27 }
 0x4ba   :  { %1031 = vmatpush3.bf16.msra.mxu0 %v361_v29  ;;  %v346_v33 = vmul.f32 %v1151_v28, %v1135_v6  ;;  %v350_v37 = vpack.c.bf16 %v348_v30, %v347_v34 }
 0x4bb   :  { %1079 = vmatprep.subr.msk.bf16.mxu0 %vm359_vm3, %v562_v31 }
 0x4bc   :  { %v349_v35 = vpack.c.bf16 %v346_v33, %v345_v32 }
 0x4bd   :  { %v1153_v39 = vpop.eup %1152 }
 0x4be   :  { %1032 = vmatprep.mubr.msk.bf16.mxu0 %vm234_vm2, %v349_v35  ;;  %v1155_v41 = vpop.eup %1154  ;;  %v558_v48 = vmul.f32 %v1153_v39, %v1137_v9 }
 0x4bf   :  { %1033 = vmatmul.mubr.msk.bf16.vlgmr.msra.gmra.mxu0 %vm234_vm2, %v350_v37  ;;  %v557_v47 = vmul.f32 %v1155_v41, %v1139_v10  ;;  %v1119_v41 = vld [vmem:[#allocation7] sm:$0xff]  }
 0x4c0   :  { %1043 = vmatpush3.bf16.msra.mxu0 %v570_v43 }
 0x4c1   :  { %v1157_v44 = vpop.eup %1156  ;;  %1056 = vmatprep.subr.bf16.mxu0 %v1304_v15  ;;  %v560_v51 = vpack.c.bf16 %v558_v48, %v557_v47 }
 0x4c2   :  { %v1159_v45 = vpop.eup %1158  ;;  %v556_v46 = vmul.f32 %v1157_v44, %v1141_v12 }
 0x4c3   :  { %v555_v49 = vmul.f32 %v1159_v45, %v1143_v14 }
 0x4c5   :  { %v559_v50 = vpack.c.bf16 %v556_v46, %v555_v49 }
 0x4c7   :  { %1044 = vmatprep.mubr.msk.bf16.mxu0 %vm234_vm2, %v559_v50 }
 0x4c8   :  { %1045 = vmatmul.mubr.msk.bf16.vlgmr.msra.gmra.mxu0 %vm234_vm2, %v560_v51 }
 0x4c9   :  { %1060 = vmatprep.mubr.msk.bf16.mxu0 %vm1305_vm1, %v1304_v15 }
 0x57f   :  { %v1034_v52 = vpop.f32.mrf.mxu0 }
 0x581   :  { %v397_v53 = vpop.f32.mrf.mxu0 }
 0x583   :  { %v1035_v54 = vpop.f32.mrf.mxu0 }
 0x585   :  { %v400_v55 = vpop.f32.mrf.mxu0 }
 0x588   :  { %v1046_v57 = vpop.f32.mrf.mxu0 }
 0x589   :  { %v1104_v2 = vpack.i.bf16 %v1046_v57, %v1034_v52 }
 0x58a   :  { %v606_v59 = vpop.f32.mrf.mxu0 }
 0x58c   :  { %v1047_v60 = vpop.f32.mrf.mxu0 }
 0x58d   :  { %v1109_v61 = vpack.i.bf16 %v1047_v60, %v1035_v54  ;;  %v1120_v60 = vld [vmem:[%s1597_s12 + $0x18] sm:$0xff]  }
 0x58e   :  { %v609_v62 = vpop.f32.mrf.mxu0 }
 0x58f   :  { %v1099_v63 = vpack.i.bf16 %v609_v62, %v400_v55  ;;  %1110 = vrot.lane.b32.xlu0 %v1109_v61, %s1311_s24  ;;  %v979_v55 = vld [vmem:[#allocation5] ss:$0 sm:$0xff]  ;;  %v1121_v61 = vld [vmem:[%s1597_s12 + $0x10] sm:$0xff]   ;;  %v1122_v62 = vld [vmem:[%s1597_s12 + $0x8] sm:$0xff]  }
 0x591   :  { %1100 = vrot.lane.b32.xlu1 %v1099_v63, %s1312_s10  ;;  %v1123_v63 = vld [vmem:[%s1597_s12] sm:$0xff]   ;;  %s1314_s12 = smov [#allocation11]  }
 0x592   :  { %s942_s9 = sshll.u32 %s1314_s12, 4  ;;  %s943_s9 = int_to_ptr.vmem [resolvable:$true] %s942_s9 }
 0x593   :  { %s1248_s17 = scalar_lea.vmem %s943_s9, 256  ;;  %p1253_p7 = scmp.lt.s32.totalorder %s943_s9, %s943_s9 }
 0x594   :  { %p1249_p6 = scmp.ne.s32.totalorder %s943_s9, %s1248_s17  ;;  %p1254_p8 = scmp.lt.s32.totalorder %s1248_s17, %s1248_s17 }
 0x595   :  { %1105 = vrot.lane.b32.xlu1 %v1104_v2, %s1313_s25  ;;  %v980_v2 = vld [vmem:[#allocation8] ss:$0 sm:$0xff] }
 0x596   :  { %p1255_p9 = por %p1254_p8, %p1253_p7 }
 0x598   :  { %p1256_p10 = pnand %p1255_p9, %p1249_p6 }
 0x601   :  { %v1111_v6 = vpop.permute.xlu0 %1110 }
 0x602   :  { %v1113_v10 = vunpack.i.h.bf16 %v1111_v6  ;;  %v1112_v11 = vunpack.i.l.bf16 %v1111_v6 }
 0x603   :  { %v1101_v3 = vpop.permute.xlu1 %1100 }
 0x604   :  { %v1103_v4 = vunpack.i.h.bf16 %v1101_v3  ;;  %v1102_v5 = vunpack.i.l.bf16 %v1101_v3 }
 0x606   :  { %v633_v12 = vsel %vm234_vm2, %v606_v59, %v1103_v4  ;;  %v424_v13 = vsel %vm234_vm2, %v397_v53, %v1102_v5 }
 0x607   :  { %v1106_v7 = vpop.permute.xlu1 %1105 }
 0x608   :  { %v1108_v8 = vunpack.i.h.bf16 %v1106_v7  ;;  %v1107_v9 = vunpack.i.l.bf16 %v1106_v7 }
 0x60a   :  { %v426_v14 = vsel %vm425_vm4, %v424_v13, %v1107_v9  ;;  %v634_v16 = vsel %vm425_vm4, %v633_v12, %v1108_v8 }
 0x60b   :  { %v428_v17 = vsel %vm427_vm5, %v426_v14, %v1112_v11  ;;  %v635_v18 = vsel %vm427_vm5, %v634_v16, %v1113_v10 }
 0x60c   :  { %v636_v19 = vpack.c.bf16 %v635_v18, %v428_v17 }
 0x60e   :  { %1053 = vmatmul.mubr.msk.bf16.vlgmr.msra.gmra.mxu1 %vm106_vm0, %v636_v19 }
 0x60f   :  { %1072 = vmatprep.mubr.msk.bf16.mxu1 %vm1305_vm1, %v1304_v15  ;;  %1065 = vmatpush3.bf16.msra.mxu1 %v1120_v60 }
 0x610   :  { %1066 = vmatprep.subr.bf16.mxu1 %v1304_v15 }
 0x613   :  { %1067 = vmatpush3.bf16.msra.mxu1 %v1121_v61 }
 0x614   :  { %1068 = vmatprep.subr.bf16.mxu1 %v1304_v15 }
 0x617   :  { %1069 = vmatpush3.bf16.msra.mxu1 %v1122_v62 }
 0x618   :  { %1070 = vmatprep.subr.bf16.mxu1 %v1304_v15 }
 0x61b   :  { %1071 = vmatpush3.bf16.msra.mxu1 %v1123_v63 }
 0x6ce   :  { %v697_v21 = vpop.f32.mrf.mxu1 }
 0x6cf   :  { %v698_v22 = vadd.f32 %v974_v20, %v697_v21 }
 0x6d0   :  { %v1054_v23 = vpop.f32.mrf.mxu1 }
 0x6d1   :  { %v1531_v24 = vadd.f32 %v698_v22, %v1412_v0 }
 0x6d2   :  { %v700_v25 = vpop.f32.mrf.mxu1 }
 0x6d3   :  { %v701_v26 = vadd.f32 %v974_v20, %v700_v25  ;;  %v708_v42 = vsel %vm106_vm0, %v1531_v24, 0.0 }
 0x6d4   :  { %709 = vadd.xlane.f32.xlu1 %v708_v42  ;;  %v1055_v38 = vpop.f32.mrf.mxu1 }
 0x6d5   :  { %v1536_v27 = vadd.f32 %v701_v26, %v1417_v1 }
 0x6d7   :  { %v711_v28 = vsel %vm106_vm0, %v1536_v27, 0.0 }
 0x6d8   :  { %712 = vadd.xlane.f32.xlu0 %v711_v28 }
 0x6e5   :  { %917 = vrot.lane.b32.xlu1 %v1447_v36, %s1307_s3  ;;  %v1118_v36 = vld [vmem:[#allocation7 + $0x8] sm:$0xff]  }
 0x6e6   :  { %1057 = vmatpush3.bf16.msra.mxu0 %v1118_v36 }
 0x6e7   :  { %1058 = vmatprep.subr.bf16.mxu0 %v1304_v15 }
 0x6ea   :  { %1059 = vmatpush3.bf16.msra.mxu0 %v1119_v41 }
 0x75d   :  { %v710_v29 = vpop.xlane.xlu1 %709 }
 0x75e   :  { %v714_v0 = vmul.f32 0.03125, %v710_v29 }
 0x760   :  { %v716_v30 = vsub.f32 %v1531_v24, %v714_v0 }
 0x761   :  { %v918_v31 = vpop.permute.xlu1 %917  ;;  %v713_v32 = vpop.xlane.xlu0 %712 }
 0x762   :  { %923 = vst.msk [vmem:[#allocation11] sm:$0xff] %vm425_vm4, %v918_v31  ;;  %v715_v33 = vmul.f32 0.03125, %v713_v32  ;;  %v718_v34 = vmul.f32 %v716_v30, %v716_v30 }
 0x764   :  { %v717_v1 = vsub.f32 %v1536_v27, %v715_v33  ;;  %v720_v35 = vsel %vm106_vm0, %v718_v34, 0.0 }
 0x765   :  { %721 = vadd.xlane.f32.xlu0 %v720_v35 }
 0x766   :  { %v719_v37 = vmul.f32 %v717_v1, %v717_v1 }
 0x768   :  { %v723_v39 = vsel %vm106_vm0, %v719_v37, 0.0 }
 0x769   :  { %724 = vadd.xlane.f32.xlu0 %v723_v39 }
 0x77f   :  { %919 = vrot.lane.b32.xlu0 %v1454_v40, %s1307_s3  ;;  %v978_v40 = vld [vmem:[%s1593_s8] ss:$0 sm:$0xff] }
 0x7ee   :  { %v722_v43 = vpop.xlane.xlu0 %721 }
 0x7ef   :  { %v726_v44 = vmul.f32 0.03125, %v722_v43 }
 0x7f1   :  { %v728_v45 = vadd.f32 1e-05, %v726_v44 }
 0x7f2   :  { %v725_v46 = vpop.xlane.xlu0 %724 }
 0x7f3   :  { %1160 = vrsqrt.f32 %v728_v45  ;;  %v727_v47 = vmul.f32 0.03125, %v725_v46 }
 0x7f5   :  { %v729_v48 = vadd.f32 1e-05, %v727_v47 }
 0x7f6   :  { %v920_v49 = vpop.permute.xlu0 %919 }
 0x7f7   :  { %1162 = vrsqrt.f32 %v729_v48  ;;  %924 = vst.msk [vmem:[#allocation11 + $0x8] sm:$0xff] %vm425_vm4, %v920_v49 }
 0x800   :  { %v1161_v50 = vpop.eup %1160 }
 0x801   :  { %v732_v51 = vmul.f32 %v1161_v50, %v716_v30 }
 0x803   :  { %v740_v54 = vmul.f32 %v978_v40, %v732_v51 }
 0x804   :  { %v1163_v52 = vpop.eup %1162 }
 0x805   :  { %v733_v53 = vmul.f32 %v1163_v52, %v717_v1  ;;  %v748_v57 = vadd.f32 %v979_v55, %v740_v54 }
 0x807   :  { %v741_v56 = vmul.f32 %v978_v40, %v733_v53 }
 0x809   :  { %v749_v58 = vadd.f32 %v979_v55, %v741_v56 }
 0x80b   :  { %v750_v59 = vpack.c.bf16 %v749_v58, %v748_v57 }
 0x80d   :  { %1061 = vmatmul.mubr.msk.bf16.vlgmr.msra.gmra.mxu0 %vm106_vm0, %v750_v59 }
 0x8cd   :  { %v811_v3 = vpop.f32.mrf.mxu0 }
 0x8ce   :  { %v812_v4 = vadd.f32 %v980_v2, %v811_v3 }
 0x8cf   :  { %v1062_v5 = vpop.f32.mrf.mxu0 }
 0x8d0   :  { %v820_v6 = vmul.f32 0.70710677, %v812_v4  ;;  %v818_v15 = vmul.f32 0.5, %v812_v4 }
 0x8d1   :  { %v814_v7 = vpop.f32.mrf.mxu0 }
 0x8d2   :  { %1164 = verf.f32 %v820_v6  ;;  %v815_v8 = vadd.f32 %v980_v2, %v814_v7 }
 0x8d3   :  { %v1063_v9 = vpop.f32.mrf.mxu0 }
 0x8d4   :  { %v821_v10 = vmul.f32 0.70710677, %v815_v8  ;;  %v819_v14 = vmul.f32 0.5, %v815_v8 }
 0x8d6   :  { %1166 = verf.f32 %v821_v10 }
 0x8df   :  { %v1165_v11 = vpop.eup %1164 }
 0x8e0   :  { %v824_v12 = vadd.f32 1.0, %v1165_v11 }
 0x8e2   :  { %v826_v17 = vmul.f32 %v824_v12, %v818_v15 }
 0x8e3   :  { %v1167_v13 = vpop.eup %1166 }
 0x8e4   :  { %v825_v16 = vadd.f32 1.0, %v1167_v13 }
 0x8e6   :  { %v827_v18 = vmul.f32 %v825_v16, %v819_v14 }
 0x8e8   :  { %v828_v19 = vpack.c.bf16 %v827_v18, %v826_v17 }
 0x8ea   :  { %1073 = vmatmul.mubr.msk.bf16.vlgmr.msra.gmra.mxu1 %vm868_vm6, %v828_v19 }
 0x8eb   :  { %1259 = shalt.err (!%p1256_p10)
}
 0x8ec   :  { %s1315_s18 = smov 128   ;;  %v984_v20 = vld [vmem:[%s1598_s13] ss:$0 sm:$0xff]  ;;  %s1316_s20 = smov [#allocation10]  }
 0x8ed   :  { %948 = dma.vmem_to_hbm [thread:$0]  %s943_s9, 256, %s1600_s15, [#allocation12], %s1315_s18, %s1315_s18, %s1312_s10  }
 0x8ee   :  { %s930_s22 = sshll.u32 %s1316_s20, 4  ;;  %s931_s22 = int_to_ptr.vmem [resolvable:$true] %s930_s22 }
 0x8ef   :  { %s1268_s15 = scalar_lea.vmem %s931_s22, 256  ;;  %p1273_p12 = scmp.lt.s32.totalorder %s931_s22, %s931_s22 }
 0x8f0   :  { %p1269_p11 = scmp.ne.s32.totalorder %s931_s22, %s1268_s15  ;;  %p1274_p13 = scmp.lt.s32.totalorder %s1268_s15, %s1268_s15 }
 0x8f2   :  { %p1275_p0 = por %p1274_p13, %p1273_p12 }
 0x8f4   :  { %p1276_p1 = pnand %p1275_p0, %p1269_p11 }
 0x9aa   :  { %v906_v21 = vpop.f32.mrf.mxu1 }
 0x9ab   :  { %v907_v22 = vadd.f32 %v984_v20, %v906_v21 }
 0x9ac   :  { %v1074_v23 = vpop.f32.mrf.mxu1 }
 0x9ad   :  { %v913_v25 = vadd.f32 %v907_v22, %v1531_v24 }
 0x9ae   :  { %v909_v26 = vpop.f32.mrf.mxu1 }
 0x9af   :  { %915 = vst.msk [vmem:[#allocation10] sm:$0xff] %vm106_vm0, %v913_v25  ;;  %v910_v42 = vadd.f32 %v984_v20, %v909_v26 }
 0x9b0   :  { %v1075_v38 = vpop.f32.mrf.mxu1 }
 0x9b1   :  { %v914_v28 = vadd.f32 %v910_v42, %v1536_v27 }
 0x9b3   :  { %916 = vst.msk [vmem:[#allocation10 + $0x8] sm:$0xff] %vm106_vm0, %v914_v28 }
 0x9b4   :  { %1279 = shalt.err (!%p1276_p1)
}
 0x9b5   :  { %936 = dma.vmem_to_hbm [thread:$0]  %s931_s22, 256, %s1599_s14, [#allocation4], %s1315_s18, %s1315_s18, %s1312_s10  }
 0x9b6   :  { %1294 = dma.done.wait [#allocation4], 256  }
 0x9b7   :  { %1295 = vsyncadd [#allocation4], 4294967040 }
 0x9b8   :  { %1296 = dma.done.wait [#allocation12], 256  }
 0x9b9   :  { %1297 = vsyncadd [#allocation12], 4294967040 }
 0x9ba   :  { %955 = vsyncpa [#allocation3], 1 }
 0x9bb   :  { %956 = vsyncpa [#allocation6], 1 }
 0x9bc   :  { %957 = vsyncpa [#allocation9], 1 }
 0x9bd   :  { %958 = vsyncpa [#allocation4], 1 }
 0x9be   :  { %959 = vsyncpa [#allocation12], 1 }

</bundles_post_ra>
